<compile_context>
chip_gen: v6e
topology: v6e:2x2x1
jax: 0.10.0
libtpu: 0.0.40
codegen_flags: <defaults>
</compile_context>

<pallas_src>
import jax
import jax.numpy as jnp
from jax.experimental import pallas as pl
from jax.experimental.pallas import tpu as pltpu

EPS = 1e-5


def siamese_kernel(x1_ref, x2_ref, w1_ref, fb1_ref, w2_ref, fb2_ref, out_ref):
    """One batch tile.

    x1_ref : (TM, IL)  branch-1 rows for this tile (VMEM, streamed)
    x2_ref : (TM, IL)  branch-2 rows for this tile (VMEM, streamed)
    w1_ref : (IL, E)   BN1-folded embedder weight (VMEM, grid-resident)
    fb1_ref: (1, E)    BN1-folded embedder bias   (VMEM, grid-resident)
    w2_ref : (1, E)    BN2-folded classifier weight row (VMEM, grid-resident)
    fb2_ref: (1, 1)    BN2-folded classifier bias (SMEM scalar)
    out_ref: (TM, 1)
    """
    w1 = w1_ref[...]
    fb1 = fb1_ref[...]

    # Two MXU dots (one per branch); accumulation in f32.  DMA-bound, so the
    # extra dot is free.  (Default matmul precision is fine at IL=128; bump to
    # precision=HIGHEST if IL grows.)
    h1 = jnp.dot(x1_ref[...], w1, preferred_element_type=jnp.float32) + fb1
    h2 = jnp.dot(x2_ref[...], w1, preferred_element_type=jnp.float32) + fb1
    h1 = jnp.maximum(h1, 0.0)
    h2 = jnp.maximum(h2, 0.0)

    d = jnp.abs(h1 - h2)

    # E -> 1 contraction on VPU (multiply) + XLU (lane reduce) instead of an
    # N=1 MXU matmul; scalar bias comes from SMEM.
    out_ref[...] = (
        jnp.sum(d * w2_ref[...], axis=-1, keepdims=True) + fb2_ref[0, 0]
    )


def fold_params(p):
    """Fold inference-mode BatchNorm into the adjacent Linear weights/biases."""
    s1 = jax.lax.rsqrt(p["v1"] + EPS) * p["g1"]              # (1, IL)
    w1 = p["w1"] * s1.reshape(-1, 1)                          # (IL, E)
    fb1 = p["fb1"] + (p["b1"] - p["m1"] * s1) @ p["w1"]       # (1, E)

    s2 = jax.lax.rsqrt(p["v2"] + EPS) * p["g2"]               # (1, E)
    w2row = p["w2"].reshape(1, -1) * s2                       # (1, E)
    fb2 = p["fb2"] + (p["b2"] - p["m2"] * s2) @ p["w2"]       # (1, 1)
    return w1, fb1, w2row, fb2


def _pick_tm(B, IL, itemsize):
    """Default batch tile: >=4 grid steps when possible, capped for VMEM/HBM."""
    tm = max(16, min(2048, B // 4))
    tm = ((tm + 15) // 16) * 16                      # sublane / bf16-pack aligned
    # Keep (2 inputs x 2 pipeline buffers x tm x IL x itemsize) under ~8 MiB so
    # v5e's 16 MiB scoped-VMEM default is never the limit.
    max_tm = max(16, ((8 * 1024 * 1024) // (4 * IL * itemsize)) // 16 * 16)
    return min(tm, max_tm)


def siamese_forward(x1, x2, params, *, tm=None, compute_dtype=jnp.float32):
    """Fused Siamese forward. x1, x2: (B, IL) f32 -> (B, 1) f32."""
    B, IL = x1.shape
    E = params["w1"].shape[1]
    itemsize = jnp.dtype(compute_dtype).itemsize

    if tm is None:
        tm = _pick_tm(B, IL, itemsize)
    assert tm % 16 == 0, "tile rows must be a multiple of 16"

    grid_b = pl.cdiv(B, tm)
    B_pad = grid_b * tm

    w1, fb1, w2row, fb2 = fold_params(params)
    w1 = w1.astype(compute_dtype)
    x1 = x1.astype(compute_dtype)
    x2 = x2.astype(compute_dtype)
    if B_pad != B:
        pad = ((0, B_pad - B), (0, 0))
        x1 = jnp.pad(x1, pad)
        x2 = jnp.pad(x2, pad)

    out = pl.pallas_call(
        siamese_kernel,
        out_shape=jax.ShapeDtypeStruct((B_pad, 1), jnp.float32),
        grid_spec=pltpu.PrefetchScalarGridSpec(
            num_scalar_prefetch=0,
            grid=(grid_b,),
            in_specs=[
                # x tiles stream per grid step (double-buffered by Pallas).
                # If a profile shows exposed DMA, add pipeline_mode=pl.Buffered(3).
                pl.BlockSpec((tm, IL), lambda i: (i, 0)),
                pl.BlockSpec((tm, IL), lambda i: (i, 0)),
                # Weights/biases: constant block index -> stay VMEM-resident.
                pl.BlockSpec((IL, E), lambda i: (0, 0)),
                pl.BlockSpec((1, E), lambda i: (0, 0)),
                pl.BlockSpec((1, E), lambda i: (0, 0)),
                # Scalar classifier bias in SMEM (no padded VMEM tile / DMA).
                pl.BlockSpec(memory_space=pltpu.MemorySpace.SMEM),
            ],
            out_specs=pl.BlockSpec((tm, 1), lambda i: (i, 0)),
        ),
        compiler_params=pltpu.CompilerParams(
            dimension_semantics=("parallel",),  # batch axis is independent
        ),
    )(x1, x2, w1, fb1, w2row, fb2)

    return out[:B] if B_pad != B else out


def init_params(key, IL, E):
    """Deterministic synthetic parameters mirroring the PyTorch module's shapes."""
    ks = jax.random.split(key, 8)
    # embedder.BN (num_features=IL): gamma, beta, running_mean, running_var
    g1 = jax.random.normal(ks[0], (1, IL), jnp.float32) * 0.1 + 1.0
    b1 = jax.random.normal(ks[1], (1, IL), jnp.float32) * 0.1
    m1 = jax.random.normal(ks[2], (1, IL), jnp.float32) * 0.1
    v1 = jnp.abs(jax.random.normal(ks[3], (1, IL), jnp.float32)) * 0.1 + 1.0
    # embedder.FC: PyTorch weight is (E, IL); store transposed (IL, E)
    w1 = jax.random.normal(ks[4], (IL, E), jnp.float32) * (1.0 / jnp.sqrt(IL))
    fb1 = jax.random.normal(ks[5], (1, E), jnp.float32) * 0.01
    # classifier.BN (num_features=E)
    g2 = jax.random.normal(ks[0], (1, E), jnp.float32) * 0.05 + 1.0
    b2 = jax.random.normal(ks[1], (1, E), jnp.float32) * 0.05
    m2 = jax.random.normal(ks[2], (1, E), jnp.float32) * 0.05
    v2 = jnp.abs(jax.random.normal(ks[3], (1, E), jnp.float32)) * 0.1 + 1.0
    # classifier.FC: PyTorch weight is (1, E); store transposed (E, 1)
    w2 = jax.random.normal(ks[6], (E, 1), jnp.float32) * (1.0 / jnp.sqrt(E))
    fb2 = jax.random.normal(ks[7], (1, 1), jnp.float32) * 0.01
    return dict(g1=g1, b1=b1, m1=m1, v1=v1, w1=w1, fb1=fb1,
                g2=g2, b2=b2, m2=m2, v2=v2, w2=w2, fb2=fb2)


def reference_forward(x1, x2, p):
    """Unfused pure-JAX reference (matches the PyTorch module in eval mode)."""
    def embed(x):
        xn = (x - p["m1"]) / jnp.sqrt(p["v1"] + EPS) * p["g1"] + p["b1"]
        return jnp.maximum(xn @ p["w1"] + p["fb1"], 0.0)
    d = jnp.abs(embed(x1) - embed(x2))
    dn = (d - p["m2"]) / jnp.sqrt(p["v2"] + EPS) * p["g2"] + p["b2"]
    return dn @ p["w2"] + p["fb2"]


if __name__ == "__main__":
    # Small demo: batch=200 (not a tile multiple -> exercises pad+slice),
    # FEATURE_VECTOR_LENGTH=128, embed=32.  Default tm -> 64 rows, 4 grid steps.
    B, IL, E = 200, 128, 32
    key = jax.random.PRNGKey(0)
    k_x1, k_x2, k_p = jax.random.split(key, 3)
    x1 = jax.random.normal(k_x1, (B, IL), jnp.float32)
    x2 = jax.random.normal(k_x2, (B, IL), jnp.float32)
    params = init_params(k_p, IL, E)

    ref = reference_forward(x1, x2, params)

    # f32 path (default).
    out = jax.block_until_ready(siamese_forward(x1, x2, params))
    assert out.shape == (B, 1)
    assert jnp.allclose(out, ref, atol=1e-4, rtol=1e-4)

    # bf16 streaming path (halves HBM read bytes; f32 accumulation).
    out_bf16 = jax.block_until_ready(
        siamese_forward(x1, x2, params, compute_dtype=jnp.bfloat16))
    assert out_bf16.shape == (B, 1)
    assert jnp.allclose(out_bf16, ref, atol=5e-2, rtol=5e-2)

    print("KERNEL_OK")
</pallas_src>

<mosaic_0001>
module attributes {stable_mosaic.version = 11 : i64} {
  func.func @siamese_kernel(%arg0: i32, %arg1: memref<64x128xf32, #tpu.memory_space<vmem>>, %arg2: memref<64x128xf32, #tpu.memory_space<vmem>>, %arg3: memref<128x32xf32, #tpu.memory_space<vmem>>, %arg4: memref<1x32xf32, #tpu.memory_space<vmem>>, %arg5: memref<1x32xf32, #tpu.memory_space<vmem>>, %arg6: memref<1x1xf32, #tpu.memory_space<smem>>, %arg7: memref<64x1xf32, #tpu.memory_space<vmem>>) attributes {dimension_semantics = [#tpu.dimension_semantics<parallel>], iteration_bounds = array<i64: 4>, scalar_prefetch = 0 : i64, scratch_operands = 0 : i64, tpu.core_type = #tpu.core_type<tc>, window_params = [{transform_indices = @transform_0, window_bounds = array<i64: 64, 128>}, {transform_indices = @transform_1, window_bounds = array<i64: 64, 128>}, {pipeline_mode = #tpu.pipeline_mode<synchronous>, transform_indices = @transform_2, window_bounds = array<i64: 128, 32>}, {pipeline_mode = #tpu.pipeline_mode<synchronous>, transform_indices = @transform_3, window_bounds = array<i64: 1, 32>}, {pipeline_mode = #tpu.pipeline_mode<synchronous>, transform_indices = @transform_4, window_bounds = array<i64: 1, 32>}, {transform_indices = @transform_5, window_bounds = array<i64: 1, 1>}, {transform_indices = @transform_6, window_bounds = array<i64: 64, 1>}]} {
    %c0 = arith.constant 0 : index
    %c0_0 = arith.constant 0 : index
    %0 = vector.load %arg3[%c0, %c0_0] : memref<128x32xf32, #tpu.memory_space<vmem>>, vector<128x32xf32>
    %c0_1 = arith.constant 0 : index
    %c0_2 = arith.constant 0 : index
    %1 = vector.load %arg4[%c0_1, %c0_2] : memref<1x32xf32, #tpu.memory_space<vmem>>, vector<1x32xf32>
    %c0_3 = arith.constant 0 : index
    %c0_4 = arith.constant 0 : index
    %2 = vector.load %arg1[%c0_3, %c0_4] : memref<64x128xf32, #tpu.memory_space<vmem>>, vector<64x128xf32>
    %cst = arith.constant dense<0.000000e+00> : vector<64x32xf32>
    %3 = tpu.matmul %2, %0, %cst {dimension_numbers = #tpu.dot_dimension_numbers<[1], [0], [0], [1], [0, 0, 1, 1], [], []>} : vector<64x128xf32>, vector<128x32xf32>, vector<64x32xf32> -> vector<64x32xf32>
    %4 = vector.broadcast %1 : vector<1x32xf32> to vector<64x32xf32>
    %5 = arith.addf %3, %4 : vector<64x32xf32>
    %c0_5 = arith.constant 0 : index
    %c0_6 = arith.constant 0 : index
    %6 = vector.load %arg2[%c0_5, %c0_6] : memref<64x128xf32, #tpu.memory_space<vmem>>, vector<64x128xf32>
    %cst_7 = arith.constant dense<0.000000e+00> : vector<64x32xf32>
    %7 = tpu.matmul %6, %0, %cst_7 {dimension_numbers = #tpu.dot_dimension_numbers<[1], [0], [0], [1], [0, 0, 1, 1], [], []>} : vector<64x128xf32>, vector<128x32xf32>, vector<64x32xf32> -> vector<64x32xf32>
    %8 = vector.broadcast %1 : vector<1x32xf32> to vector<64x32xf32>
    %9 = arith.addf %7, %8 : vector<64x32xf32>
    %cst_8 = arith.constant 0.000000e+00 : f32
    %10 = vector.broadcast %cst_8 : f32 to vector<64x32xf32>
    %11 = arith.maximumf %5, %10 : vector<64x32xf32>
    %cst_9 = arith.constant 0.000000e+00 : f32
    %12 = vector.broadcast %cst_9 : f32 to vector<64x32xf32>
    %13 = arith.maximumf %9, %12 : vector<64x32xf32>
    %14 = arith.subf %11, %13 : vector<64x32xf32>
    %15 = math.absf %14 : vector<64x32xf32>
    %c0_10 = arith.constant 0 : index
    %c0_11 = arith.constant 0 : index
    %16 = vector.load %arg5[%c0_10, %c0_11] : memref<1x32xf32, #tpu.memory_space<vmem>>, vector<1x32xf32>
    %17 = vector.broadcast %16 : vector<1x32xf32> to vector<64x32xf32>
    %18 = arith.mulf %15, %17 : vector<64x32xf32>
    %cst_12 = arith.constant dense<0.000000e+00> : vector<64xf32>
    %19 = vector.multi_reduction <add>, %18, %cst_12 [1] : vector<64x32xf32> to vector<64xf32>
    %20 = vector.shape_cast %19 : vector<64xf32> to vector<64x1xf32>
    %c0_13 = arith.constant 0 : index
    %c0_14 = arith.constant 0 : index
    %21 = memref.load %arg6[%c0_13, %c0_14] : memref<1x1xf32, #tpu.memory_space<smem>>
    %22 = vector.broadcast %21 : f32 to vector<64x1xf32>
    %23 = arith.addf %20, %22 : vector<64x1xf32>
    %c0_15 = arith.constant 0 : index
    %c0_16 = arith.constant 0 : index
    %24 = vector.load %arg7[%c0_15, %c0_16] : memref<64x1xf32, #tpu.memory_space<vmem>>, vector<64x1xf32>
    tpu.vector_store %arg7[%c0_15, %c0_16], %23 {strides = array<i32>} : memref<64x1xf32, #tpu.memory_space<vmem>>, vector<64x1xf32>,
    return
  }
  func.func @transform_0(%arg0: i32) -> (i32, i32) {
    %c0_i32 = arith.constant 0 : i32
    %c0_i32_0 = arith.constant 0 : i32
    return %arg0, %c0_i32 : i32, i32
  }
  func.func @transform_1(%arg0: i32) -> (i32, i32) {
    %c0_i32 = arith.constant 0 : i32
    %c0_i32_0 = arith.constant 0 : i32
    return %arg0, %c0_i32 : i32, i32
  }
  func.func @transform_2(%arg0: i32) -> (i32, i32) {
    %c0_i32 = arith.constant 0 : i32
    %c0_i32_0 = arith.constant 0 : i32
    %c0_i32_1 = arith.constant 0 : i32
    return %c0_i32, %c0_i32_0 : i32, i32
  }
  func.func @transform_3(%arg0: i32) -> (i32, i32) {
    %c0_i32 = arith.constant 0 : i32
    %c0_i32_0 = arith.constant 0 : i32
    %c0_i32_1 = arith.constant 0 : i32
    return %c0_i32, %c0_i32_0 : i32, i32
  }
  func.func @transform_4(%arg0: i32) -> (i32, i32) {
    %c0_i32 = arith.constant 0 : i32
    %c0_i32_0 = arith.constant 0 : i32
    %c0_i32_1 = arith.constant 0 : i32
    return %c0_i32, %c0_i32_0 : i32, i32
  }
  func.func @transform_5(%arg0: i32) -> (i32, i32) {
    %c0_i32 = arith.constant 0 : i32
    %c0_i32_0 = arith.constant 0 : i32
    %c0_i32_1 = arith.constant 0 : i32
    return %c0_i32, %c0_i32_0 : i32, i32
  }
  func.func @transform_6(%arg0: i32) -> (i32, i32) {
    %c0_i32 = arith.constant 0 : i32
    %c0_i32_0 = arith.constant 0 : i32
    return %arg0, %c0_i32 : i32, i32
  }
}

</mosaic_0001>

<bundles_post_ra>
// kernel: tpu_custom_call.1
= control target key start
LH: loop header
LB: loop body
LE: loop exit
PB: predicated region body
PF: predicated region fallthrough
CT: control target
= control target key end

     0   :  { %s1358_s0 = inlined_call_operand.hbm [shape: f32[256,128], index: 0, kind: input, shape index: {}]   ;;  %s1359_s1 = inlined_call_operand.hbm [shape: f32[256,128], index: 1, kind: input, shape index: {}]   ;;  %s1360_s2 = inlined_call_operand.vmem [shape: f32[128,32], index: 2, kind: input, shape index: {}]   ;;  %s1361_s3 = inlined_call_operand.vmem [shape: f32[1,32], index: 3, kind: input, shape index: {}]   ;;  %s1362_s4 = inlined_call_operand.vmem [shape: f32[1,32], index: 4, kind: input, shape index: {}]   ;;  %s1363_s5 = inlined_call_operand.<no memory space> [shape: f32[1,1], index: 5, kind: input, shape index: {}]   ;;  %s1364_s6 = inlined_call_operand.vmem [shape: f32[256,1], index: 6, kind: output, shape index: {}]  }
   0x1   :  { %11 = sst [smem:[#allocation2]] %s1363_s5 }
   0x2   :  { %12 = vsyncpa [#allocation4], 0 }
   0x3   :  { %14 = vsyncpa [#allocation4 + $0x1], 0 }
   0x4   :  { %15 = vsyncpa [#allocation6], 0 }
   0x5   :  { %17 = vsyncpa [#allocation6 + $0x1], 0  ;;  %s1087_s23 = smov 0   ;;  %s1089_s24 = smov 0  }
   0x6   :  { %s1091_s25 = smov 0   ;;  %s1093_s26 = smov 0  }
   0x7 LB: > { %s746_s5 = sadd.s32 4294967295, %s1043_s26   ;;  %s1107_s27 = sadd.s32 1, %s1043_s26   ;;  %s1043_s26 = sphi %s1093_s26, %s1374_s26   ;;  %s1039_s25 = sphi %s1091_s25, %s1373_s25   ;;  %s1035_s24 = sphi %s1089_s24, %s1372_s24   ;;  %s1031_s23 = sphi %s1087_s23, %s1371_s23  }
   0x8   : > { %s27_s28 = ssub.s32 %s1043_s26, %s1107_s27  ;;  %s30_s29 = sadd.s32 1, %s1039_s25 }
   0x9   : > { %p28_p0 = scmp.eq.s32.totalorder %s27_s28, 0  ;;  %p37_p1 = scmp.ne.s32.totalorder %s1039_s25, %s1035_s24 }
   0xa   : > { %p38_p2 = scmp.eq.s32.totalorder %s1043_s26, 0  ;;  %p43_p3 = scmp.ne.s32.totalorder %s1035_s24, %s1031_s23 }
   0xb   : > { %s1117_s30 = scalar_select %p28_p0, %s1039_s25, %s30_s29  }
   0xc   : > { %p39_p4 = por %p38_p2, %p37_p1  ;;  %p44_p5 = scmp.eq.s32.totalorder %s746_s5, 0 }
   0xd   : > { %p914_p6 = scmp.lt.s32.totalorder %s1043_s26, 4  ;;  %s1127_s8 = sand.u32 1, %s1039_s25  }
   0xe   : > { %p1122_p7 = por %p44_p5, %p43_p3  ;;  %s750_s9 = sshll.u32 %s1127_s8, 6 }
   0xf   : > { %s765_s10 = sshll.u32 %s1043_s26, 10  ;;  %s219_s14 = scalar_lea.vmem [#allocation3], %s750_s9 }
  0x10   : > { %s1366_s7 = scalar_select %p1122_p7, 1, 0 }
  0x11   : > { %s1136_s13 = scalar_lea.hbm %s1358_s0, %s765_s10  ;;  %s226_s15 = sshll.u32 %s219_s14, 4  ;;  %s1140_s15 = int_to_ptr.vmem [resolvable:$true] %s226_s15 }
  0x12   : > { %p1142_p8 = pnand %p914_p6, %p39_p4  ;;  %s216_s17 = scalar_lea.sflag [#allocation4], %s1127_s8 }
  0x13   : > { %s949_s18 = scalar_lea.hbm %s1136_s13, 1024  ;;  %s954_s21 = scalar_lea.hbm %s1358_s0, 4096 }
  0x14   : > { %p950_p10 = scmp.ne.s32.totalorder %s1136_s13, %s949_s18  ;;  %p951_p11 = pneg %p1142_p8 }
  0x15   : > { %p955_p0 = scmp.lt.s32.totalorder %s1136_s13, %s1358_s0  ;;  %p956_p1 = scmp.lt.s32.totalorder %s954_s21, %s949_s18 }
  0x16   : > { %p952_p12 = pnand %p951_p11, %p950_p10 }
  0x17   : > { %p957_p2 = por %p956_p1, %p955_p0 }
  0x18   : > { %p953_p13 = pneg %p952_p12 }
  0x1a   : > { %p958_p3 = pnand %p957_p2, %p953_p13 }
  0x1c   : > { %961 = shalt.err (!%p958_p3)
}
  0x1d   : > { %s962_s28 = scalar_lea.vmem %s1140_s15, 1024  ;;  %s1045_s29 = smov [#allocation3]  }
  0x1e   : > { %p963_p4 = scmp.ne.s32.totalorder %s1140_s15, %s962_s28  ;;  %s967_s11 = sshll.u32 %s1045_s29, 4  ;;  %s968_s11 = int_to_ptr.vmem [resolvable:$false] %s967_s11 }
  0x1f   : > { %s969_s12 = scalar_lea.vmem %s968_s11, 2048  ;;  %p970_p10 = scmp.lt.s32.totalorder %s1140_s15, %s968_s11 }
  0x20   : > { %p965_p5 = pnand %p963_p4, %p951_p11  ;;  %p971_p12 = scmp.lt.s32.totalorder %s969_s12, %s962_s28 }
  0x22   : > { %p966_p6 = pneg %p965_p5  ;;  %p972_p9 = por %p971_p12, %p970_p10 }
  0x24   : > { %p973_p0 = pnand %p972_p9, %p966_p6 }
  0x26   : > { %976 = shalt.err (!%p973_p0)
}
  0x27   : > { %s1046_s14 = smov 128   ;;  %s1047_s18 = smov 8  }
  0x28   : > { %910 = dma.hbm_to_vmem [thread:$0]  (!%p1142_p8), %s1136_s13, 1024, %s1140_s15, %s216_s17, %s1046_s14, %s1046_s14, %s1047_s18  }
  0x29   : > { %p255_p9 = scmp.lt.s32.totalorder %s1043_s26, 5  ;;  %s1183_s21 = scalar_lea.hbm %s1359_s1, %s765_s10 }
  0x2a   : > { %p1368_p13 = scmp.ge.s32.totalorder %s1043_s26, 1  ;;  %s240_s23 = scalar_lea.vmem [#allocation5], %s750_s9 }
  0x2b   : > { %s247_s28 = sshll.u32 %s240_s23, 4  ;;  %s237_s13 = scalar_lea.sflag [#allocation6], %s1127_s8  ;;  %s1193_s28 = int_to_ptr.vmem [resolvable:$true] %s247_s28 }
  0x2c   : > { %p1187_p1 = pnand %p1368_p13, %p255_p9  ;;  %s977_s15 = scalar_lea.hbm %s1183_s21, 1024 }
  0x2d   : > { %p978_p2 = scmp.ne.s32.totalorder %s1183_s21, %s977_s15  ;;  %s982_s29 = scalar_lea.hbm %s1359_s1, 4096 }
  0x2e   : > { %p983_p5 = scmp.lt.s32.totalorder %s1183_s21, %s1359_s1  ;;  %p984_p6 = scmp.lt.s32.totalorder %s982_s29, %s977_s15 }
  0x2f   : > { %p980_p3 = pnand %p978_p2, %p951_p11 }
  0x30   : > { %p985_p10 = por %p984_p6, %p983_p5 }
  0x31   : > { %p981_p4 = pneg %p980_p3 }
  0x33   : > { %p986_p12 = pnand %p985_p10, %p981_p4 }
  0x35   : > { %989 = shalt.err (!%p986_p12)
}
  0x36   : > { %s990_s8 = scalar_lea.vmem %s1193_s28, 1024  ;;  %s1048_s9 = smov [#allocation5]  }
  0x37   : > { %p991_p0 = scmp.ne.s32.totalorder %s1193_s28, %s990_s8  ;;  %s995_s19 = sshll.u32 %s1048_s9, 4  ;;  %s996_s19 = int_to_ptr.vmem [resolvable:$false] %s995_s19 }
  0x38   : > { %s997_s20 = scalar_lea.vmem %s996_s19, 2048  ;;  %p998_p2 = scmp.lt.s32.totalorder %s1193_s28, %s996_s19 }
  0x39   : > { %p993_p9 = pnand %p991_p0, %p951_p11  ;;  %p999_p3 = scmp.lt.s32.totalorder %s997_s20, %s990_s8 }
  0x3b   : > { %p994_p13 = pneg %p993_p9  ;;  %p1000_p7 = por %p999_p3, %p998_p2 }
  0x3d   : > { %p1001_p5 = pnand %p1000_p7, %p994_p13 }
  0x3f   : > { %1004 = shalt.err (!%p1001_p5)
}
  0x40   : > { %913 = dma.hbm_to_vmem [thread:$0]  (!%p1142_p8), %s1183_s21, 1024, %s1193_s28, %s237_s13, %s1046_s14, %s1046_s14, %s1047_s18  }
  0x41   : > { %259 = sbr.rel (%p1187_p1) target bundleno = 469 (0x1d5), region = 44  ;;  %s261_s23 = sand.u32 (!%p1187_p1), 1, %s1035_s24  }
  0x42   : > { %s757_s15 = sshll.u32 (!%p1187_p1), %s261_s23, 6  ;;  %s262_s10 = scalar_lea.sflag (!%p1187_p1), [#allocation4], %s261_s23 }
  0x43   : > { %s1224_s17 = scalar_lea.vmem (!%p1187_p1), [#allocation3], %s757_s15  ;;  %p1370_p7 = scmp.ne.s32.totalorder (!%p1187_p1), %s1366_s7, 0 }
  0x46   : > { %1022 = dma.done.wait (%p1370_p7), %s262_s10, 1024  }
  0x47   : > { %1024 = vsyncadd (%p1370_p7), %s262_s10, 4294966272  ;;  %s271_s16 = scalar_lea.sflag [#allocation6], %s261_s23  ;;  %s1230_s29 = scalar_lea.vmem [#allocation5], %s757_s15 }
  0x48   : > { %1026 = dma.done.wait (%p1370_p7), %s271_s16, 1024  }
  0x49   : > { %1028 = vsyncadd (%p1370_p7), %s271_s16, 4294966272  ;;  %v331_v0 = vld [vmem:[%s1360_s2 + $0x78] sm:$0xff]  ;;  %v330_v1 = vld [vmem:[%s1360_s2 + $0x70] sm:$0xff]  ;;  %vm612_vm0 = vcmask 261120   ;;  %s759_s14 = sshll.u32 %s746_s5, 3  ;;  %s637_s18 = sld [smem:[#allocation2]] }
  0x4a   : > { %815 = vmatprep.subr.mxu0 %v331_v0  ;;  %859 = vmatprep.subr.mxu1 %v331_v0  ;;  %v329_v2 = vld [vmem:[%s1360_s2 + $0x68] sm:$0xff]  ;;  %v328_v3 = vld [vmem:[%s1360_s2 + $0x60] sm:$0xff]  ;;  %v327_v4 = vld [vmem:[%s1360_s2 + $0x58] sm:$0xff]  ;;  %p311_p8 = scmp.lt.s32.totalorder %s759_s14, 31  ;;  %vm647_vm1 = vcmask 7168  }
  0x4b   : > { %816 = vmatpush3.msra.mxu0 %v331_v0  ;;  %860 = vmatpush3.msra.mxu1 %v331_v0  ;;  %v326_v5 = vld [vmem:[%s1360_s2 + $0x50] sm:$0xff]  ;;  %v325_v6 = vld [vmem:[%s1360_s2 + $0x48] sm:$0xff]  ;;  %v324_v7 = vld [vmem:[%s1360_s2 + $0x40] sm:$0xff] }
  0x4c   : > { %817 = vmatprep.subr.mxu0 %v330_v1  ;;  %861 = vmatprep.subr.mxu1 %v330_v1  ;;  %v323_v8 = vld [vmem:[%s1360_s2 + $0x38] sm:$0xff]  ;;  %v322_v9 = vld [vmem:[%s1360_s2 + $0x30] sm:$0xff]  ;;  %v321_v10 = vld [vmem:[%s1360_s2 + $0x28] sm:$0xff]  ;;  %s1376_s14 = smov (!%p311_p8, %s759_s14), 31 }
  0x4d   : > { %818 = vmatpush3.msra.mxu0 %v330_v1  ;;  %862 = vmatpush3.msra.mxu1 %v330_v1  ;;  %v320_v11 = vld [vmem:[%s1360_s2 + $0x20] sm:$0xff]  ;;  %v319_v12 = vld [vmem:[%s1360_s2 + $0x18] sm:$0xff]  ;;  %v318_v13 = vld [vmem:[%s1360_s2 + $0x10] sm:$0xff]  ;;  %s760_s21 = sshll.u32 %s1376_s14, 3 }
  0x4e   : > { %819 = vmatprep.subr.mxu0 %v329_v2  ;;  %863 = vmatprep.subr.mxu1 %v329_v2  ;;  %v317_v14 = vld [vmem:[%s1360_s2 + $0x8] sm:$0xff]  ;;  %v316_v15 = vld [vmem:[%s1360_s2] sm:$0xff]  ;;  %v335_v20 = vld [vmem:[%s1224_s17 + $0x10] sm:$0xff]  ;;  %s314_s13 = scalar_lea.vmem %s1364_s6, %s760_s21 }
  0x4f   : > { %820 = vmatpush3.msra.mxu0 %v329_v2  ;;  %864 = vmatpush3.msra.mxu1 %v329_v2  ;;  %v333_v16 = vld [vmem:[%s1224_s17] sm:$0xff]  ;;  %v334_v18 = vld [vmem:[%s1224_s17 + $0x8] sm:$0xff]  ;;  %v454_v21 = vld [vmem:[%s1230_s29 + $0x10] sm:$0xff] }
  0x50   : > { %821 = vmatprep.subr.mxu0 %v328_v3  ;;  %865 = vmatprep.subr.mxu1 %v328_v3  ;;  %v452_v17 = vld [vmem:[%s1230_s29] sm:$0xff]  ;;  %v453_v19 = vld [vmem:[%s1230_s29 + $0x8] sm:$0xff]  ;;  %v336_v22 = vld [vmem:[%s1224_s17 + $0x18] sm:$0xff] }
  0x51   : > { %822 = vmatpush3.msra.mxu0 %v328_v3  ;;  %866 = vmatpush3.msra.mxu1 %v328_v3  ;;  %v455_v23 = vld [vmem:[%s1230_s29 + $0x18] sm:$0xff]  ;;  %v337_v24 = vld [vmem:[%s1224_s17 + $0x20] sm:$0xff]  ;;  %v338_v26 = vld [vmem:[%s1224_s17 + $0x28] sm:$0xff] }
  0x52   : > { %823 = vmatprep.subr.mxu0 %v327_v4  ;;  %867 = vmatprep.subr.mxu1 %v327_v4  ;;  %v456_v25 = vld [vmem:[%s1230_s29 + $0x20] sm:$0xff]  ;;  %v457_v27 = vld [vmem:[%s1230_s29 + $0x28] sm:$0xff]  ;;  %v339_v28 = vld [vmem:[%s1224_s17 + $0x30] sm:$0xff] }
  0x53   : > { %824 = vmatpush3.msra.mxu0 %v327_v4  ;;  %868 = vmatpush3.msra.mxu1 %v327_v4  ;;  %v458_v29 = vld [vmem:[%s1230_s29 + $0x30] sm:$0xff]  ;;  %v340_v30 = vld [vmem:[%s1224_s17 + $0x38] sm:$0xff]  ;;  %v1303_v32 = vld [vmem:[%s1361_s3] ss:$0 sm:$0xff] }
  0x54   : > { %825 = vmatprep.subr.mxu0 %v326_v5  ;;  %869 = vmatprep.subr.mxu1 %v326_v5  ;;  %v459_v31 = vld [vmem:[%s1230_s29 + $0x38] sm:$0xff]  ;;  %v762_v56 = vld [vmem:[%s1362_s4] ss:$0 sm:$0xff] }
  0x55   : > { %826 = vmatpush3.msra.mxu0 %v326_v5  ;;  %870 = vmatpush3.msra.mxu1 %v326_v5 }
  0x56   : > { %827 = vmatprep.subr.mxu0 %v325_v6  ;;  %871 = vmatprep.subr.mxu1 %v325_v6 }
  0x57   : > { %828 = vmatpush3.msra.mxu0 %v325_v6  ;;  %872 = vmatpush3.msra.mxu1 %v325_v6 }
  0x58   : > { %829 = vmatprep.subr.mxu0 %v324_v7  ;;  %873 = vmatprep.subr.mxu1 %v324_v7 }
  0x59   : > { %830 = vmatpush3.msra.mxu0 %v324_v7  ;;  %874 = vmatpush3.msra.mxu1 %v324_v7 }
  0x5a   : > { %831 = vmatprep.subr.mxu0 %v323_v8  ;;  %875 = vmatprep.subr.mxu1 %v323_v8 }
  0x5b   : > { %832 = vmatpush3.msra.mxu0 %v323_v8  ;;  %876 = vmatpush3.msra.mxu1 %v323_v8 }
  0x5c   : > { %833 = vmatprep.subr.mxu0 %v322_v9  ;;  %877 = vmatprep.subr.mxu1 %v322_v9 }
  0x5d   : > { %834 = vmatpush3.msra.mxu0 %v322_v9  ;;  %878 = vmatpush3.msra.mxu1 %v322_v9 }
  0x5e   : > { %835 = vmatprep.subr.mxu0 %v321_v10  ;;  %879 = vmatprep.subr.mxu1 %v321_v10 }
  0x5f   : > { %836 = vmatpush3.msra.mxu0 %v321_v10  ;;  %880 = vmatpush3.msra.mxu1 %v321_v10 }
  0x60   : > { %837 = vmatprep.subr.mxu0 %v320_v11  ;;  %881 = vmatprep.subr.mxu1 %v320_v11 }
  0x61   : > { %838 = vmatpush3.msra.mxu0 %v320_v11  ;;  %882 = vmatpush3.msra.mxu1 %v320_v11 }
  0x62   : > { %839 = vmatprep.subr.mxu0 %v319_v12  ;;  %883 = vmatprep.subr.mxu1 %v319_v12 }
  0x63   : > { %840 = vmatpush3.msra.mxu0 %v319_v12  ;;  %884 = vmatpush3.msra.mxu1 %v319_v12 }
  0x64   : > { %841 = vmatprep.subr.mxu0 %v318_v13  ;;  %885 = vmatprep.subr.mxu1 %v318_v13 }
  0x65   : > { %842 = vmatpush3.msra.mxu0 %v318_v13  ;;  %886 = vmatpush3.msra.mxu1 %v318_v13 }
  0x66   : > { %843 = vmatprep.subr.mxu0 %v317_v14  ;;  %887 = vmatprep.subr.mxu1 %v317_v14 }
  0x67   : > { %844 = vmatpush3.msra.mxu0 %v317_v14  ;;  %888 = vmatpush3.msra.mxu1 %v317_v14 }
  0x68   : > { %845 = vmatprep.subr.mxu0 %v316_v15  ;;  %889 = vmatprep.subr.mxu1 %v316_v15 }
  0x69   : > { %846 = vmatpush3.msra.mxu0 %v316_v15  ;;  %847 = vmatprep.mubr.f32.mxu0 %v333_v16 }
  0x6a   : > { %890 = vmatpush3.msra.mxu1 %v316_v15  ;;  %891 = vmatprep.mubr.f32.mxu1 %v452_v17 }
  0x6b   : > { %848 = vmatmul.mubr.f32.vlgmr.msra.gmra.mxu0 %v334_v18  ;;  %892 = vmatmul.mubr.f32.vlgmr.msra.gmra.mxu1 %v453_v19 }
  0x6c   : > { %850 = vmatprep.mubr.f32.mxu0 %v335_v20  ;;  %894 = vmatprep.mubr.f32.mxu1 %v454_v21 }
  0x6f   : > { %851 = vmatmul.mubr.f32.gmra.mxu0 %v336_v22  ;;  %895 = vmatmul.mubr.f32.gmra.mxu1 %v455_v23 }
  0x70   : > { %853 = vmatprep.mubr.f32.mxu0 %v337_v24  ;;  %897 = vmatprep.mubr.f32.mxu1 %v456_v25 }
  0x73   : > { %854 = vmatmul.mubr.f32.gmra.mxu0 %v338_v26  ;;  %898 = vmatmul.mubr.f32.gmra.mxu1 %v457_v27 }
  0x74   : > { %856 = vmatprep.mubr.f32.mxu0 %v339_v28  ;;  %900 = vmatprep.mubr.f32.mxu1 %v458_v29 }
  0x77   : > { %857 = vmatmul.mubr.f32.gmra.mxu0 %v340_v30  ;;  %901 = vmatmul.mubr.f32.gmra.mxu1 %v459_v31 }
 0x12b   : > { %v849_v33 = vpop.f32.mrf.mxu0  ;;  %v893_v34 = vpop.f32.mrf.mxu1 }
 0x12c   : > { %v419_v35 = vadd.f32 %v849_v33, %v1303_v32  ;;  %v532_v36 = vadd.f32 %v893_v34, %v1303_v32 }
 0x12d   : > { %v413_v37 = vpop.f32.mrf.mxu0  ;;  %v526_v38 = vpop.f32.mrf.mxu1 }
 0x12e   : > { %v566_v39 = vmax.f32 %v419_v35, 0.0  ;;  %v574_v40 = vmax.f32 %v532_v36, 0.0  ;;  %v414_v41 = vadd.f32 %v1303_v32, %v413_v37  ;;  %v527_v42 = vadd.f32 %v1303_v32, %v526_v38 }
 0x12f   : > { %v852_v43 = vpop.f32.mrf.mxu0  ;;  %v896_v44 = vpop.f32.mrf.mxu1 }
 0x130   : > { %v582_v45 = vsub.f32 %v566_v39, %v574_v40  ;;  %v565_v46 = vmax.f32 %v414_v41, 0.0  ;;  %v573_v47 = vmax.f32 %v527_v42, 0.0  ;;  %v429_v48 = vadd.f32 %v852_v43, %v1303_v32 }
 0x131   : > { %v542_v49 = vadd.f32 %v896_v44, %v1303_v32  ;;  %v423_v50 = vpop.f32.mrf.mxu0  ;;  %v536_v51 = vpop.f32.mrf.mxu1 }
 0x132   : > { %v590_v52 = vand.u32 2147483647, %v582_v45  ;;  %v581_v53 = vsub.f32 %v565_v46, %v573_v47  ;;  %v568_v54 = vmax.f32 %v429_v48, 0.0  ;;  %v424_v55 = vadd.f32 %v1303_v32, %v423_v50 }
 0x133   : > { %v576_v57 = vmax.f32 %v542_v49, 0.0  ;;  %v537_v58 = vadd.f32 %v1303_v32, %v536_v51  ;;  %v855_v59 = vpop.f32.mrf.mxu0  ;;  %v899_v60 = vpop.f32.mrf.mxu1  ;;  %v638_v50 = vstv %s637_s18 }
 0x134   : > { %v589_v61 = vand.u32 2147483647, %v581_v53  ;;  %v567_v62 = vmax.f32 %v424_v55, 0.0  ;;  %v439_v63 = vadd.f32 %v855_v59, %v1303_v32  ;;  %v552_v0 = vadd.f32 %v899_v60, %v1303_v32 }
 0x135   : > { %v584_v1 = vsub.f32 %v568_v54, %v576_v57  ;;  %v575_v2 = vmax.f32 %v537_v58, 0.0  ;;  %v433_v3 = vpop.f32.mrf.mxu0  ;;  %v546_v4 = vpop.f32.mrf.mxu1  ;;  %v605_v5 = vmul.f32 %v762_v56, %v590_v52 }
 0x136   : > { %v570_v6 = vmax.f32 %v439_v63, 0.0  ;;  %v578_v7 = vmax.f32 %v552_v0, 0.0  ;;  %v434_v8 = vadd.f32 %v1303_v32, %v433_v3  ;;  %v547_v9 = vadd.f32 %v1303_v32, %v546_v4 }
 0x137   : > { %v592_v10 = vand.u32 2147483647, %v584_v1  ;;  %v583_v11 = vsub.f32 %v567_v62, %v575_v2  ;;  %v902_v12 = vpop.f32.mrf.mxu1  ;;  %v616_v13 = vsel %vm612_vm0, %v605_v5, 0.0  ;;  %v858_v14 = vpop.f32.mrf.mxu0  ;;  %v604_v15 = vmul.f32 %v762_v56, %v589_v61 }
 0x138   : > { %v586_v16 = vsub.f32 %v570_v6, %v578_v7  ;;  %v569_v17 = vmax.f32 %v434_v8, 0.0  ;;  %v577_v18 = vmax.f32 %v547_v9, 0.0  ;;  %v562_v19 = vadd.f32 %v902_v12, %v1303_v32  ;;  %617 = vadd.xlane.f32.xlu0 %v616_v13 }
 0x139   : > { %v591_v20 = vand.u32 2147483647, %v583_v11  ;;  %v449_v21 = vadd.f32 %v858_v14, %v1303_v32  ;;  %v443_v22 = vpop.f32.mrf.mxu0  ;;  %v556_v23 = vpop.f32.mrf.mxu1  ;;  %v607_v24 = vmul.f32 %v762_v56, %v592_v10  ;;  %v613_v25 = vsel %vm612_vm0, %v604_v15, 0.0 }
 0x13a   : > { %v594_v26 = vand.u32 2147483647, %v586_v16  ;;  %v585_v27 = vsub.f32 %v569_v17, %v577_v18  ;;  %v580_v28 = vmax.f32 %v562_v19, 0.0  ;;  %v444_v29 = vadd.f32 %v1303_v32, %v443_v22 }
 0x13b   : > { %v572_v30 = vmax.f32 %v449_v21, 0.0  ;;  %v557_v31 = vadd.f32 %v1303_v32, %v556_v23  ;;  %v622_v33 = vsel %vm612_vm0, %v607_v24, 0.0  ;;  %v606_v34 = vmul.f32 %v762_v56, %v591_v20 }
 0x13c   : > { %v593_v35 = vand.u32 2147483647, %v585_v27  ;;  %v571_v36 = vmax.f32 %v444_v29, 0.0  ;;  %623 = vadd.xlane.f32.xlu1 %v622_v33  ;;  %614 = vadd.xlane.f32.xlu0 %v613_v25  ;;  %v609_v43 = vmul.f32 %v762_v56, %v594_v26 }
 0x13d   : > { %v588_v37 = vsub.f32 %v572_v30, %v580_v28  ;;  %v579_v38 = vmax.f32 %v557_v31, 0.0  ;;  %v619_v42 = vsel %vm612_vm0, %v606_v34, 0.0 }
 0x13e   : > { %v608_v39 = vmul.f32 %v762_v56, %v593_v35  ;;  %v628_v45 = vsel %vm612_vm0, %v609_v43, 0.0 }
 0x13f   : > { %v596_v40 = vand.u32 2147483647, %v588_v37  ;;  %v587_v41 = vsub.f32 %v571_v36, %v579_v38 }
 0x140   : > { %620 = vadd.xlane.f32.xlu1 %v619_v42  ;;  %v625_v44 = vsel %vm612_vm0, %v608_v39, 0.0 }
 0x141   : > { %v595_v32 = vand.u32 2147483647, %v587_v41  ;;  %626 = vadd.xlane.f32.xlu0 %v625_v44  ;;  %v611_v47 = vmul.f32 %v762_v56, %v596_v40 }
 0x143   : > { %v610_v46 = vmul.f32 %v762_v56, %v595_v32  ;;  %v634_v49 = vsel %vm612_vm0, %v611_v47, 0.0 }
 0x144   : > { %629 = vadd.xlane.f32.xlu1 %v628_v45 }
 0x145   : > { %v631_v48 = vsel %vm612_vm0, %v610_v46, 0.0 }
 0x146   : > { %632 = vadd.xlane.f32.xlu0 %v631_v48 }
 0x148   : > { %635 = vadd.xlane.f32.xlu1 %v634_v49 }
 0x1c1   : > { %v618_v51 = vpop.xlane.xlu0 %617 }
 0x1c2   : > { %v640_v52 = vadd.f32 %v638_v50, %v618_v51 }
 0x1c4   : > { %649 = vst.msk [vmem:[%s314_s13 + $0x8] sm:$0xff] %vm647_vm1, %v640_v52 }
 0x1c5   : > { %v624_v53 = vpop.xlane.xlu1 %623  ;;  %v615_v54 = vpop.xlane.xlu0 %614 }
 0x1c6   : > { %v642_v55 = vadd.f32 %v638_v50, %v624_v53  ;;  %v639_v56 = vadd.f32 %v638_v50, %v615_v54 }
 0x1c8   : > { %651 = vst.msk [vmem:[%s314_s13 + $0x18] sm:$0xff] %vm647_vm1, %v642_v55  ;;  %648 = vst.msk [vmem:[%s314_s13] sm:$0xff] %vm647_vm1, %v639_v56 }
 0x1c9   : > { %v621_v57 = vpop.xlane.xlu1 %620 }
 0x1ca   : > { %v641_v58 = vadd.f32 %v638_v50, %v621_v57  ;;  %v627_v59 = vpop.xlane.xlu0 %626 }
 0x1cb   : > { %v643_v60 = vadd.f32 %v638_v50, %v627_v59 }
 0x1cc   : > { %650 = vst.msk [vmem:[%s314_s13 + $0x10] sm:$0xff] %vm647_vm1, %v641_v58 }
 0x1cd   : > { %652 = vst.msk [vmem:[%s314_s13 + $0x20] sm:$0xff] %vm647_vm1, %v643_v60  ;;  %v630_v61 = vpop.xlane.xlu1 %629 }
 0x1ce   : > { %v644_v62 = vadd.f32 %v638_v50, %v630_v61 }
 0x1cf   : > { %v633_v63 = vpop.xlane.xlu0 %632 }
 0x1d0   : > { %653 = vst.msk [vmem:[%s314_s13 + $0x28] sm:$0xff] %vm647_vm1, %v644_v62  ;;  %v645_v0 = vadd.f32 %v638_v50, %v633_v63 }
 0x1d1   : > { %v636_v1 = vpop.xlane.xlu1 %635 }
 0x1d2   : > { %654 = vst.msk [vmem:[%s314_s13 + $0x30] sm:$0xff] %vm647_vm1, %v645_v0  ;;  %v646_v2 = vadd.f32 %v638_v50, %v636_v1 }
 0x1d4   : > { %655 = vst.msk [vmem:[%s314_s13 + $0x38] sm:$0xff] %vm647_vm1, %v646_v2 }
 0x1d5 PF: > { %p20_p11 = scmp.ge.s32.totalorder %s1107_s27, 6   ;;  %s1371_s23 = smov %s1035_s24 }
 0x1d6   : > { %s1372_s24 = smov %s1039_s25  ;;  %s1373_s25 = smov %s1117_s30 }
 0x1d7   : > { %s1374_s26 = smov %s1107_s27  ;;  %22 = sbr.rel (!%p20_p11) target bundleno = 7 (0x7), region = 97 }
 0x1dc   :  { %678 = vsyncpa [#allocation4], 1 }
 0x1dd   :  { %680 = vsyncpa [#allocation4 + $0x1], 1 }
 0x1de   :  { %681 = vsyncpa [#allocation6], 1 }
 0x1df   :  { %683 = vsyncpa [#allocation6 + $0x1], 1 }

</bundles_post_ra>
